<compile_context>
chip_gen: v7x
topology: tpu7x:2x2x1
jax: 0.10.0
libtpu: 0.0.40
codegen_flags: <defaults>
</compile_context>

<pallas_src>
import functools

import jax
import jax.numpy as jnp
from jax import lax
from jax.experimental import pallas as pl
from jax.experimental.pallas import tpu as pltpu


_SQRT_HALF = 0.7071067811865476  # 1/sqrt(2) for exact (erf-based) GELU


def _round_up(a: int, b: int) -> int:
    return ((a + b - 1) // b) * b


def _lm_head_kernel(x_ref, w1_ref, b1_ref, g_ref, beta_ref, wdec_ref, bdec_ref,
                    o_ref, h_ref, *, eps, inv_h):
    """Grid = (row_tiles, vocab_tiles); vocab is the inner, sequential axis."""
    j = pl.program_id(1)

    # Transform (dense + GELU + LayerNorm) once per row tile; result persists in
    # the VMEM scratch h_ref and is reused for every vocab tile.
    @pl.when(j == 0)
    def _():
        # Dense on the MXU: native-dtype operands, f32 accumulation.
        h = jnp.dot(x_ref[...], w1_ref[...], preferred_element_type=jnp.float32)
        h = h + b1_ref[...].astype(jnp.float32)

        # Exact (erf-based) GELU == torch.nn.GELU() default.
        h = 0.5 * h * (1.0 + lax.erf(h * _SQRT_HALF))

        # LayerNorm with fused statistics: E[h] and E[h^2] in one pass.
        mean = jnp.sum(h, axis=-1, keepdims=True) * inv_h
        mean_sq = jnp.sum(h * h, axis=-1, keepdims=True) * inv_h
        var = mean_sq - mean * mean
        normed = (h - mean) * lax.rsqrt(var + eps)
        t = normed * g_ref[...].astype(jnp.float32) + beta_ref[...].astype(jnp.float32)
        # Store in decoder dtype so the hot loop needs no per-iteration cast.
        h_ref[...] = t.astype(h_ref.dtype)

    # Decoder: (tm, H) @ (H, tv) on the MXU, f32 accumulation, + bias.
    out = jnp.dot(h_ref[...], wdec_ref[...], preferred_element_type=jnp.float32)
    out = out + bdec_ref[...].astype(jnp.float32)
    o_ref[...] = out.astype(o_ref.dtype)


def bert_lm_prediction_head(x, w1_t, b1, gamma, beta, wdec_t, bdec, *,
                            eps=1e-12, tm=256, tv=512):
    """BERT LM prediction head forward.

    x:      [..., H]
    w1_t:   [H, H]  dense weight, PRE-transposed to [in, out]
    b1:     [H]     dense bias
    gamma:  [H]     LayerNorm weight
    beta:   [H]     LayerNorm bias
    wdec_t: [H, V]  decoder (tied embedding) weight, PRE-transposed to [in, out]
    bdec:   [V]     decoder bias
    returns [..., V]
    """
    lead = x.shape[:-1]
    H = x.shape[-1]
    V = wdec_t.shape[-1]

    x2d = x.reshape(-1, H)
    M = x2d.shape[0]

    # Row tile: MXU-sized by default, clamped to a multiple of 8 for tiny inputs.
    tm_eff = min(tm, _round_up(M, 8))
    n_rows = -(-M // tm_eff)
    M_pad = n_rows * tm_eff
    if M_pad != M:
        x2d = jnp.pad(x2d, ((0, M_pad - M), (0, 0)))

    # Vocab tile: whole vocab if small, else lane-aligned tv-wide tiles (padded).
    if V <= tv:
        tv_eff, V_pad = V, V
        wdec_p, bdec_p = wdec_t, bdec
    else:
        tv_eff = tv
        V_pad = _round_up(V, tv_eff)
        wdec_p = jnp.pad(wdec_t, ((0, 0), (0, V_pad - V)))
        bdec_p = jnp.pad(bdec, ((0, V_pad - V),))
    n_cols = V_pad // tv_eff

    b1_2 = b1.reshape(1, H)
    g2 = gamma.reshape(1, H)
    beta2 = beta.reshape(1, H)
    bdec2 = bdec_p.reshape(1, V_pad)

    # Explicit VMEM budget: double-buffered pipeline buffers + resident scratch.
    est = (
        2 * H * H * w1_t.dtype.itemsize            # dense weight (resident)
        + 2 * 3 * H * 4                            # b1 / gamma / beta
        + 2 * tm_eff * H * x2d.dtype.itemsize      # x tile
        + 2 * H * tv_eff * wdec_p.dtype.itemsize   # decoder weight tile
        + 2 * tv_eff * 4                           # decoder bias tile
        + 2 * tm_eff * tv_eff * x.dtype.itemsize   # output tile
        + tm_eff * H * wdec_p.dtype.itemsize       # transform scratch
    )
    vmem_limit = int(min(est + (4 << 20), 128 << 20))

    kernel = functools.partial(_lm_head_kernel,
                               eps=float(eps), inv_h=float(1.0 / H))

    out = pl.pallas_call(
        kernel,
        out_shape=jax.ShapeDtypeStruct((M_pad, V_pad), x.dtype),
        grid=(n_rows, n_cols),
        in_specs=[
            pl.BlockSpec((tm_eff, H), lambda i, j: (i, 0)),    # x rows
            pl.BlockSpec((H, H), lambda i, j: (0, 0)),         # dense weight (resident)
            pl.BlockSpec((1, H), lambda i, j: (0, 0)),         # dense bias
            pl.BlockSpec((1, H), lambda i, j: (0, 0)),         # LN gamma
            pl.BlockSpec((1, H), lambda i, j: (0, 0)),         # LN beta
            pl.BlockSpec((H, tv_eff), lambda i, j: (0, j)),    # decoder weight tile
            pl.BlockSpec((1, tv_eff), lambda i, j: (0, j)),    # decoder bias tile
        ],
        out_specs=pl.BlockSpec((tm_eff, tv_eff), lambda i, j: (i, j)),
        scratch_shapes=[pltpu.VMEM((tm_eff, H), wdec_p.dtype)],
        compiler_params=pltpu.CompilerParams(
            dimension_semantics=("parallel", "arbitrary"),
            vmem_limit_bytes=vmem_limit,
        ),
    )(x2d, w1_t, b1_2, g2, beta2, wdec_p, bdec2)

    return out[:M, :V].reshape(*lead, V)


def _reference(x, w1, b1, gamma, beta, wdec, bdec, eps=1e-12):
    """Pure-JAX reference matching the PyTorch module (Linear layout [out, in])."""
    h = jnp.einsum("...i,oi->...o", x.astype(jnp.float32), w1.astype(jnp.float32)) + b1
    h = 0.5 * h * (1.0 + lax.erf(h / jnp.sqrt(2.0)))
    mean = jnp.mean(h, axis=-1, keepdims=True)
    var = jnp.mean((h - mean) ** 2, axis=-1, keepdims=True)
    h = (h - mean) * lax.rsqrt(var + eps) * gamma + beta
    return jnp.einsum("...i,oi->...o", h, wdec.astype(jnp.float32)) + bdec


if __name__ == "__main__":
    # Small config consistent with the module: batch=2, seq=8, hidden=32, vocab=64
    B, S, H, V = 2, 8, 32, 64
    eps = 1e-12

    key = jax.random.PRNGKey(0)
    kx, kw1, kb1, kg, kbt, kemb = jax.random.split(key, 6)

    x = jax.random.normal(kx, (B, S, H), dtype=jnp.float32)
    w1 = jax.random.normal(kw1, (H, H), dtype=jnp.float32) * 0.02     # Linear [out, in]
    b1 = jax.random.normal(kb1, (H,), dtype=jnp.float32) * 0.02
    gamma = 1.0 + 0.1 * jax.random.normal(kg, (H,), dtype=jnp.float32)
    beta = 0.1 * jax.random.normal(kbt, (H,), dtype=jnp.float32)
    emb = jax.random.normal(kemb, (V, H), dtype=jnp.float32) * 0.02   # tied embedding [V, H]
    bdec = jnp.zeros((V,), dtype=jnp.float32)                         # module inits decoder bias to 0

    # Weight prep (done once, outside the per-call hot path): pre-transpose to [in, out].
    w1_t = jnp.asarray(w1.T)
    wdec_t = jnp.asarray(emb.T)

    out = bert_lm_prediction_head(x, w1_t, b1, gamma, beta, wdec_t, bdec, eps=eps)
    jax.block_until_ready(out)

    ref = _reference(x, w1, b1, gamma, beta, emb, bdec, eps=eps)
    assert out.shape == (B, S, V), out.shape
    assert jnp.allclose(out, ref, atol=1e-3, rtol=1e-3), "mismatch vs reference"

    print("KERNEL_OK")
</pallas_src>

<mosaic_0001>
module attributes {stable_mosaic.version = 11 : i64} {
  func.func @_lm_head_kernel(%arg0: i32, %arg1: i32, %arg2: memref<16x32xf32, #tpu.memory_space<vmem>>, %arg3: memref<32x32xf32, #tpu.memory_space<vmem>>, %arg4: memref<1x32xf32, #tpu.memory_space<vmem>>, %arg5: memref<1x32xf32, #tpu.memory_space<vmem>>, %arg6: memref<1x32xf32, #tpu.memory_space<vmem>>, %arg7: memref<32x64xf32, #tpu.memory_space<vmem>>, %arg8: memref<1x64xf32, #tpu.memory_space<vmem>>, %arg9: memref<16x64xf32, #tpu.memory_space<vmem>>, %arg10: memref<16x32xf32, #tpu.memory_space<vmem>>) attributes {dimension_semantics = [#tpu.dimension_semantics<parallel>, #tpu.dimension_semantics<arbitrary>], iteration_bounds = array<i64: 1, 1>, scalar_prefetch = 0 : i64, scratch_operands = 1 : i64, tpu.core_type = #tpu.core_type<tc>, window_params = [{transform_indices = @transform_0, window_bounds = array<i64: 16, 32>}, {pipeline_mode = #tpu.pipeline_mode<synchronous>, transform_indices = @transform_1, window_bounds = array<i64: 32, 32>}, {pipeline_mode = #tpu.pipeline_mode<synchronous>, transform_indices = @transform_2, window_bounds = array<i64: 1, 32>}, {pipeline_mode = #tpu.pipeline_mode<synchronous>, transform_indices = @transform_3, window_bounds = array<i64: 1, 32>}, {pipeline_mode = #tpu.pipeline_mode<synchronous>, transform_indices = @transform_4, window_bounds = array<i64: 1, 32>}, {transform_indices = @transform_5, window_bounds = array<i64: 32, 64>}, {transform_indices = @transform_6, window_bounds = array<i64: 1, 64>}, {transform_indices = @transform_7, window_bounds = array<i64: 16, 64>}]} {
    %c0_i32 = arith.constant 0 : i32
    %0 = arith.cmpi eq, %arg1, %c0_i32 : i32
    %1 = arith.extui %0 : i1 to i32
    %c0_i32_0 = arith.constant 0 : i32
    %2 = arith.cmpi ne, %1, %c0_i32_0 : i32
    scf.if %2 {
      %c0_8 = arith.constant 0 : index
      %c0_9 = arith.constant 0 : index
      %10 = vector.load %arg2[%c0_8, %c0_9] : memref<16x32xf32, #tpu.memory_space<vmem>>, vector<16x32xf32>
      %c0_10 = arith.constant 0 : index
      %c0_11 = arith.constant 0 : index
      %11 = vector.load %arg3[%c0_10, %c0_11] : memref<32x32xf32, #tpu.memory_space<vmem>>, vector<32x32xf32>
      %cst_12 = arith.constant dense<0.000000e+00> : vector<16x32xf32>
      %12 = tpu.matmul %10, %11, %cst_12 {dimension_numbers = #tpu.dot_dimension_numbers<[1], [0], [0], [1], [0, 0, 1, 1], [], []>} : vector<16x32xf32>, vector<32x32xf32>, vector<16x32xf32> -> vector<16x32xf32>
      %c0_13 = arith.constant 0 : index
      %c0_14 = arith.constant 0 : index
      %13 = vector.load %arg4[%c0_13, %c0_14] : memref<1x32xf32, #tpu.memory_space<vmem>>, vector<1x32xf32>
      %14 = vector.broadcast %13 : vector<1x32xf32> to vector<16x32xf32>
      %15 = arith.addf %12, %14 : vector<16x32xf32>
      %cst_15 = arith.constant 5.000000e-01 : f32
      %16 = vector.broadcast %cst_15 : f32 to vector<16x32xf32>
      %17 = arith.mulf %16, %15 : vector<16x32xf32>
      %cst_16 = arith.constant 0.707106769 : f32
      %18 = vector.broadcast %cst_16 : f32 to vector<16x32xf32>
      %19 = arith.mulf %15, %18 : vector<16x32xf32>
      %20 = math.erf %19 : vector<16x32xf32>
      %cst_17 = arith.constant 1.000000e+00 : f32
      %21 = vector.broadcast %cst_17 : f32 to vector<16x32xf32>
      %22 = arith.addf %21, %20 : vector<16x32xf32>
      %23 = arith.mulf %17, %22 : vector<16x32xf32>
      %cst_18 = arith.constant dense<0.000000e+00> : vector<16xf32>
      %24 = vector.multi_reduction <add>, %23, %cst_18 [1] : vector<16x32xf32> to vector<16xf32>
      %25 = vector.shape_cast %24 : vector<16xf32> to vector<16x1xf32>
      %cst_19 = arith.constant 3.125000e-02 : f32
      %26 = vector.broadcast %cst_19 : f32 to vector<16x1xf32>
      %27 = arith.mulf %25, %26 : vector<16x1xf32>
      %28 = arith.mulf %23, %23 : vector<16x32xf32>
      %cst_20 = arith.constant dense<0.000000e+00> : vector<16xf32>
      %29 = vector.multi_reduction <add>, %28, %cst_20 [1] : vector<16x32xf32> to vector<16xf32>
      %30 = vector.shape_cast %29 : vector<16xf32> to vector<16x1xf32>
      %cst_21 = arith.constant 3.125000e-02 : f32
      %31 = vector.broadcast %cst_21 : f32 to vector<16x1xf32>
      %32 = arith.mulf %30, %31 : vector<16x1xf32>
      %33 = arith.mulf %27, %27 : vector<16x1xf32>
      %34 = arith.subf %32, %33 : vector<16x1xf32>
      %35 = vector.broadcast %27 : vector<16x1xf32> to vector<16x32xf32>
      %36 = arith.subf %23, %35 : vector<16x32xf32>
      %cst_22 = arith.constant 9.99999996E-13 : f32
      %37 = vector.broadcast %cst_22 : f32 to vector<16x1xf32>
      %38 = arith.addf %34, %37 : vector<16x1xf32>
      %39 = math.rsqrt %38 : vector<16x1xf32>
      %40 = vector.broadcast %39 : vector<16x1xf32> to vector<16x32xf32>
      %41 = arith.mulf %36, %40 : vector<16x32xf32>
      %c0_23 = arith.constant 0 : index
      %c0_24 = arith.constant 0 : index
      %42 = vector.load %arg5[%c0_23, %c0_24] : memref<1x32xf32, #tpu.memory_space<vmem>>, vector<1x32xf32>
      %43 = vector.broadcast %42 : vector<1x32xf32> to vector<16x32xf32>
      %44 = arith.mulf %41, %43 : vector<16x32xf32>
      %c0_25 = arith.constant 0 : index
      %c0_26 = arith.constant 0 : index
      %45 = vector.load %arg6[%c0_25, %c0_26] : memref<1x32xf32, #tpu.memory_space<vmem>>, vector<1x32xf32>
      %46 = vector.broadcast %45 : vector<1x32xf32> to vector<16x32xf32>
      %47 = arith.addf %44, %46 : vector<16x32xf32>
      %c0_27 = arith.constant 0 : index
      %c0_28 = arith.constant 0 : index
      %48 = vector.load %arg10[%c0_27, %c0_28] : memref<16x32xf32, #tpu.memory_space<vmem>>, vector<16x32xf32>
      tpu.vector_store %arg10[%c0_27, %c0_28], %47 {strides = array<i32>} : memref<16x32xf32, #tpu.memory_space<vmem>>, vector<16x32xf32>,
    } else {
    }
    %c0 = arith.constant 0 : index
    %c0_1 = arith.constant 0 : index
    %3 = vector.load %arg10[%c0, %c0_1] : memref<16x32xf32, #tpu.memory_space<vmem>>, vector<16x32xf32>
    %c0_2 = arith.constant 0 : index
    %c0_3 = arith.constant 0 : index
    %4 = vector.load %arg7[%c0_2, %c0_3] : memref<32x64xf32, #tpu.memory_space<vmem>>, vector<32x64xf32>
    %cst = arith.constant dense<0.000000e+00> : vector<16x64xf32>
    %5 = tpu.matmul %3, %4, %cst {dimension_numbers = #tpu.dot_dimension_numbers<[1], [0], [0], [1], [0, 0, 1, 1], [], []>} : vector<16x32xf32>, vector<32x64xf32>, vector<16x64xf32> -> vector<16x64xf32>
    %c0_4 = arith.constant 0 : index
    %c0_5 = arith.constant 0 : index
    %6 = vector.load %arg8[%c0_4, %c0_5] : memref<1x64xf32, #tpu.memory_space<vmem>>, vector<1x64xf32>
    %7 = vector.broadcast %6 : vector<1x64xf32> to vector<16x64xf32>
    %8 = arith.addf %5, %7 : vector<16x64xf32>
    %c0_6 = arith.constant 0 : index
    %c0_7 = arith.constant 0 : index
    %9 = vector.load %arg9[%c0_6, %c0_7] : memref<16x64xf32, #tpu.memory_space<vmem>>, vector<16x64xf32>
    tpu.vector_store %arg9[%c0_6, %c0_7], %8 {strides = array<i32>} : memref<16x64xf32, #tpu.memory_space<vmem>>, vector<16x64xf32>,
    return
  }
  func.func @transform_0(%arg0: i32, %arg1: i32) -> (i32, i32) {
    %c0_i32 = arith.constant 0 : i32
    %c0_i32_0 = arith.constant 0 : i32
    return %arg0, %c0_i32 : i32, i32
  }
  func.func @transform_1(%arg0: i32, %arg1: i32) -> (i32, i32) {
    %c0_i32 = arith.constant 0 : i32
    %c0_i32_0 = arith.constant 0 : i32
    %c0_i32_1 = arith.constant 0 : i32
    return %c0_i32, %c0_i32_0 : i32, i32
  }
  func.func @transform_2(%arg0: i32, %arg1: i32) -> (i32, i32) {
    %c0_i32 = arith.constant 0 : i32
    %c0_i32_0 = arith.constant 0 : i32
    %c0_i32_1 = arith.constant 0 : i32
    return %c0_i32, %c0_i32_0 : i32, i32
  }
  func.func @transform_3(%arg0: i32, %arg1: i32) -> (i32, i32) {
    %c0_i32 = arith.constant 0 : i32
    %c0_i32_0 = arith.constant 0 : i32
    %c0_i32_1 = arith.constant 0 : i32
    return %c0_i32, %c0_i32_0 : i32, i32
  }
  func.func @transform_4(%arg0: i32, %arg1: i32) -> (i32, i32) {
    %c0_i32 = arith.constant 0 : i32
    %c0_i32_0 = arith.constant 0 : i32
    %c0_i32_1 = arith.constant 0 : i32
    return %c0_i32, %c0_i32_0 : i32, i32
  }
  func.func @transform_5(%arg0: i32, %arg1: i32) -> (i32, i32) {
    %c0_i32 = arith.constant 0 : i32
    %c0_i32_0 = arith.constant 0 : i32
    return %c0_i32, %arg1 : i32, i32
  }
  func.func @transform_6(%arg0: i32, %arg1: i32) -> (i32, i32) {
    %c0_i32 = arith.constant 0 : i32
    %c0_i32_0 = arith.constant 0 : i32
    return %c0_i32, %arg1 : i32, i32
  }
  func.func @transform_7(%arg0: i32, %arg1: i32) -> (i32, i32) {
    %c0_i32 = arith.constant 0 : i32
    return %arg0, %arg1 : i32, i32
  }
}

</mosaic_0001>

<bundles_post_ra>
// kernel: tpu_custom_call.1
= control target key start
LH: loop header
LB: loop body
LE: loop exit
PB: predicated region body
PF: predicated region fallthrough
CT: control target
= control target key end

     0   :  { %12 = vsyncpa [#allocation4], 0  ;;  %s644_s0 = inlined_call_operand.hbm [shape: f32[16,32], index: 0, kind: input, shape index: {}]   ;;  %s645_s1 = inlined_call_operand.hbm [shape: f32[32,32], index: 1, kind: input, shape index: {}]   ;;  %s646_s2 = inlined_call_operand.vmem [shape: f32[1,32], index: 2, kind: input, shape index: {}]   ;;  %s647_s3 = inlined_call_operand.vmem [shape: f32[1,32], index: 3, kind: input, shape index: {}]   ;;  %s648_s4 = inlined_call_operand.vmem [shape: f32[1,32], index: 4, kind: input, shape index: {}]   ;;  %s649_s5 = inlined_call_operand.hbm [shape: f32[32,64], index: 5, kind: input, shape index: {}]   ;;  %s650_s6 = inlined_call_operand.vmem [shape: f32[1,64], index: 6, kind: input, shape index: {}]   ;;  %s651_s7 = inlined_call_operand.hbm [shape: f32[16,64], index: 7, kind: output, shape index: {}]  }
   0x1   :  { %13 = vsyncpa [#allocation7], 0 }
   0x2   :  { %14 = vsyncpa [#allocation5], 0  ;;  %s509_s24 = smov [#allocation6]   ;;  %s510_s26 = smov [#allocation3]  }
   0x3   :  { %s32_s25 = sshll.u32 %s509_s24, 4  ;;  %s20_s27 = sshll.u32 %s510_s26, 4  ;;  %s33_s25 = int_to_ptr.vmem [resolvable:$true] %s32_s25  ;;  %s555_s27 = int_to_ptr.vmem [resolvable:$true] %s20_s27 }
   0x4   :  { %s415_s30 = scalar_lea.hbm %s645_s1, 512 }
   0x5   :  { %p416_p0 = scmp.ne.s32.totalorder %s645_s1, %s415_s30  ;;  %p419_p1 = scmp.lt.u32.totalorder %s415_s30, %s645_s1 }
   0x7   :  { %p421_p2 = pnand %p419_p1, %p416_p0 }
   0x9   :  { %424 = shalt.err (!%p421_p2)
}
   0xa   :  { %s425_s12 = scalar_lea.vmem %s33_s25, 512  ;;  %p430_p4 = scmp.lt.s32.totalorder %s33_s25, %s33_s25 }
   0xb   :  { %p426_p3 = scmp.ne.s32.totalorder %s33_s25, %s425_s12  ;;  %p431_p5 = scmp.lt.s32.totalorder %s425_s12, %s425_s12 }
   0xd   :  { %p432_p6 = por %p431_p5, %p430_p4 }
   0xf   :  { %p433_p7 = pnand %p432_p6, %p426_p3 }
  0x11   :  { %436 = shalt.err (!%p433_p7)
}
  0x12   :  { %s511_s13 = smov 128   ;;  %s512_s14 = smov 8  }
  0x13   :  { %38 = dma.hbm_to_vmem [thread:$0]  %s645_s1, 512, %s33_s25, [#allocation7], %s511_s13, %s511_s13, %s512_s14  }
  0x14   :  { %s437_s19 = scalar_lea.hbm %s644_s0, 256 }
  0x15   :  { %p438_p8 = scmp.ne.s32.totalorder %s644_s0, %s437_s19  ;;  %p441_p9 = scmp.lt.u32.totalorder %s437_s19, %s644_s0 }
  0x17   :  { %p443_p10 = pnand %p441_p9, %p438_p8 }
  0x19   :  { %446 = shalt.err (!%p443_p10)
}
  0x1a   :  { %s447_s24 = scalar_lea.vmem %s555_s27, 256  ;;  %p452_p12 = scmp.lt.s32.totalorder %s555_s27, %s555_s27 }
  0x1b   :  { %p448_p11 = scmp.ne.s32.totalorder %s555_s27, %s447_s24  ;;  %p453_p13 = scmp.lt.s32.totalorder %s447_s24, %s447_s24 }
  0x1d   :  { %p454_p0 = por %p453_p13, %p452_p12 }
  0x1f   :  { %p455_p1 = pnand %p454_p0, %p448_p11 }
  0x21   :  { %458 = shalt.err (!%p455_p1)
}
  0x22   :  { %26 = dma.hbm_to_vmem [thread:$0]  %s644_s0, 256, %s555_s27, [#allocation4], %s511_s13, %s511_s13, %s512_s14  }
  0x23   :  { %s513_s26 = smov [#allocation8]   ;;  %s459_s8 = scalar_lea.hbm %s649_s5, 512 }
  0x24   :  { %s50_s28 = sshll.u32 %s513_s26, 4  ;;  %p460_p2 = scmp.ne.s32.totalorder %s649_s5, %s459_s8  ;;  %s51_s28 = int_to_ptr.vmem [resolvable:$true] %s50_s28 }
  0x25   :  { %p463_p3 = scmp.lt.u32.totalorder %s459_s8, %s649_s5 }
  0x27   :  { %p465_p4 = pnand %p463_p3, %p460_p2 }
  0x29   :  { %468 = shalt.err (!%p465_p4)
}
  0x2a   :  { %s469_s15 = scalar_lea.vmem %s51_s28, 512  ;;  %p474_p6 = scmp.lt.s32.totalorder %s51_s28, %s51_s28 }
  0x2b   :  { %p470_p5 = scmp.ne.s32.totalorder %s51_s28, %s469_s15  ;;  %p475_p7 = scmp.lt.s32.totalorder %s469_s15, %s469_s15 }
  0x2d   :  { %p476_p8 = por %p475_p7, %p474_p6 }
  0x2f   :  { %p477_p9 = pnand %p476_p8, %p470_p5 }
  0x31   :  { %480 = shalt.err (!%p477_p9)
}
  0x32   :  { %56 = dma.hbm_to_vmem [thread:$0]  %s649_s5, 512, %s51_s28, [#allocation7], %s511_s13, %s511_s13, %s512_s14  }
  0x33   :  { %503 = dma.done.wait [#allocation4], 256  }
  0x34   :  { %504 = vsyncadd [#allocation4], 4294967040 }
  0x35   :  { %505 = dma.done.wait [#allocation7], 1024  }
  0x36   :  { %506 = vsyncadd [#allocation7], 4294966272  ;;  %vm85_vm0 = vcmask 261120   ;;  %v74_v0 = vld [vmem:[#allocation6] sm:$0xff]  ;;  %v75_v1 = vld [vmem:[#allocation6 + $0x8] sm:$0xff]  ;;  %vm322_vm1 = vcmask 523264  }
  0x37   :  { %v76_v2 = vld [vmem:[#allocation6 + $0x10] sm:$0xff]  ;;  %v385_v3 = vpack.c.bf16 %v75_v1, %v74_v0  ;;  %v77_v4 = vld [vmem:[#allocation6 + $0x18] sm:$0xff]  ;;  %v343_v8 = vld [vmem:[%s646_s2] ss:$0 sm:$0xff] }
  0x38   :  { %v72_v5 = vld [vmem:[#allocation3] sm:$0xff]  ;;  %v389_v6 = vpack.c.bf16 %v77_v4, %v76_v2  ;;  %v73_v7 = vld [vmem:[#allocation3 + $0x8] sm:$0xff]  ;;  %v229_v29 = vld [vmem:[#allocation8] sm:$0xff] }
  0x39   :  { %371 = vmatprep.mubr.msk.f32.mxu0 %vm85_vm0, %v72_v5  ;;  %386 = vmatprep.subr.bf16.mxu0 %v385_v3  ;;  %v230_v30 = vld [vmem:[#allocation8 + $0x8] sm:$0xff]  ;;  %v231_v32 = vld [vmem:[#allocation8 + $0x10] sm:$0xff]  ;;  %v232_v33 = vld [vmem:[#allocation8 + $0x18] sm:$0xff] }
  0x3a   :  { %388 = vmatpush3.bf16.msra.mxu0 %v385_v3  ;;  %v393_v31 = vpack.c.bf16 %v230_v30, %v229_v29  ;;  %v397_v34 = vpack.c.bf16 %v232_v33, %v231_v32  ;;  %v346_v51 = vld [vmem:[%s647_s3] ss:$0 sm:$0xff] }
  0x3b   :  { %390 = vmatprep.subr.bf16.mxu0 %v389_v6  ;;  %v347_v53 = vld [vmem:[%s648_s4] ss:$0 sm:$0xff]  ;;  %s514_s4 = smov [#allocation9]  }
  0x3c   :  { %394 = vmatprep.subr.bf16.mxu1 %v393_v31  ;;  %v348_v63 = vld [vmem:[%s650_s6] ss:$0 sm:$0xff]  ;;  %s330_s21 = sshll.u32 %s514_s4, 4  ;;  %s331_s21 = int_to_ptr.vmem [resolvable:$true] %s330_s21 }
  0x3d   :  { %396 = vmatpush3.bf16.msra.mxu1 %v393_v31  ;;  %s481_s22 = scalar_lea.vmem %s331_s21, 256  ;;  %p486_p11 = scmp.lt.s32.totalorder %s331_s21, %s331_s21 }
  0x3e   :  { %392 = vmatpush3.bf16.msra.mxu0 %v389_v6  ;;  %398 = vmatprep.subr.bf16.mxu1 %v397_v34  ;;  %p482_p10 = scmp.ne.s32.totalorder %s331_s21, %s481_s22  ;;  %p487_p12 = scmp.lt.s32.totalorder %s481_s22, %s481_s22 }
  0x40   :  { %p488_p13 = por %p487_p12, %p486_p11 }
  0x41   :  { %372 = vmatmul.mubr.msk.f32.vlgmr.msra.gmra.mrb[0].mxu0 %vm85_vm0, %v73_v7  ;;  %400 = vmatpush3.bf16.msra.mxu1 %v397_v34 }
  0x42   :  { %p489_p0 = pnand %p488_p13, %p482_p10 }
 0x114   :  { %v373_v9 = vpop.f32.mrb[0].mxu0 }
 0x115   :  { %v164_v10 = vadd.f32 %v373_v9, %v343_v8  ;;  %v158_v11 = vpop.f32.mrb[1].mxu0 }
 0x116   :  { %v159_v12 = vadd.f32 %v343_v8, %v158_v11 }
 0x117   :  { %v170_v13 = vmul.f32 0.70710677, %v164_v10  ;;  %v168_v18 = vmul.f32 0.5, %v164_v10 }
 0x118   :  { %v169_v14 = vmul.f32 0.70710677, %v159_v12  ;;  %v167_v19 = vmul.f32 0.5, %v159_v12 }
 0x119   :  { %407 = verf.f32 %v170_v13 }
 0x11a   :  { %409 = verf.f32 %v169_v14 }
 0x123   :  { %v408_v15 = vpop.eup %407 }
 0x124   :  { %v410_v16 = vpop.eup %409  ;;  %v174_v17 = vadd.f32 1.0, %v408_v15 }
 0x125   :  { %v173_v20 = vadd.f32 1.0, %v410_v16 }
 0x126   :  { %v176_v21 = vmul.f32 %v174_v17, %v168_v18 }
 0x127   :  { %v175_v22 = vmul.f32 %v173_v20, %v167_v19 }
 0x128   :  { %v186_v26 = vmul.f32 %v176_v21, %v176_v21  ;;  %v180_v27 = vsel %vm85_vm0, %v176_v21, 0.0 }
 0x129   :  { %v177_v23 = vsel %vm85_vm0, %v175_v22, 0.0  ;;  %v185_v24 = vmul.f32 %v175_v22, %v175_v22 }
 0x12a   :  { %178 = vadd.xlane.f32.xlu0 %v177_v23  ;;  %v190_v28 = vsel %vm85_vm0, %v186_v26, 0.0 }
 0x12b   :  { %v187_v25 = vsel %vm85_vm0, %v185_v24, 0.0 }
 0x12c   :  { %188 = vadd.xlane.f32.xlu1 %v187_v25 }
 0x12e   :  { %181 = vadd.xlane.f32.xlu0 %v180_v27 }
 0x130   :  { %191 = vadd.xlane.f32.xlu1 %v190_v28 }
 0x1b7   :  { %v179_v35 = vpop.xlane.xlu0 %178 }
 0x1b8   :  { %v183_v36 = vmul.f32 0.03125, %v179_v35 }
 0x1b9   :  { %v189_v37 = vpop.xlane.xlu1 %188 }
 0x1ba   :  { %v195_v38 = vmul.f32 %v183_v36, %v183_v36  ;;  %v193_v39 = vmul.f32 0.03125, %v189_v37  ;;  %v199_v49 = vsub.f32 %v175_v22, %v183_v36 }
 0x1bb   :  { %v182_v40 = vpop.xlane.xlu0 %181 }
 0x1bc   :  { %v197_v41 = vsub.f32 %v193_v39, %v195_v38  ;;  %v184_v42 = vmul.f32 0.03125, %v182_v40 }
 0x1bd   :  { %v192_v43 = vpop.xlane.xlu1 %191 }
 0x1be   :  { %v201_v44 = vadd.f32 1e-12, %v197_v41  ;;  %v196_v45 = vmul.f32 %v184_v42, %v184_v42  ;;  %v194_v46 = vmul.f32 0.03125, %v192_v43  ;;  %v200_v55 = vsub.f32 %v176_v21, %v184_v42 }
 0x1c0   :  { %411 = vrsqrt.f32 %v201_v44  ;;  %v198_v47 = vsub.f32 %v194_v46, %v196_v45 }
 0x1c2   :  { %v202_v48 = vadd.f32 1e-12, %v198_v47 }
 0x1c4   :  { %413 = vrsqrt.f32 %v202_v48 }
 0x1ca   :  { %v412_v50 = vpop.eup %411 }
 0x1cb   :  { %v205_v52 = vmul.f32 %v412_v50, %v199_v49 }
 0x1cd   :  { %v214_v54 = vmul.f32 %v346_v51, %v205_v52 }
 0x1ce   :  { %v414_v56 = vpop.eup %413 }
 0x1cf   :  { %v223_v57 = vadd.f32 %v347_v53, %v214_v54  ;;  %v206_v58 = vmul.f32 %v414_v56, %v200_v55 }
 0x1d1   :  { %225 = vst.msk [vmem:[#allocation2] sm:$0xff] %vm85_vm0, %v223_v57  ;;  %v215_v59 = vmul.f32 %v346_v51, %v206_v58 }
 0x1d3   :  { %v224_v60 = vadd.f32 %v347_v53, %v215_v59 }
 0x1d5   :  { %226 = vst.msk [vmem:[#allocation2 + $0x8] sm:$0xff] %vm85_vm0, %v224_v60 }
 0x1d8   :  { %v227_v61 = vld [vmem:[#allocation2] sm:$0xff] }
 0x1d9   :  { %382 = vmatprep.mubr.msk.f32.mxu1 %vm85_vm0, %v227_v61 }
 0x1dc   :  { %v228_v62 = vld [vmem:[#allocation2 + $0x8] sm:$0xff] }
 0x1dd   :  { %383 = vmatmul.mubr.msk.f32.vlgmr.msra.gmra.mrb[0].mxu1 %vm85_vm0, %v228_v62 }
 0x2b0   :  { %v384_v0 = vpop.f32.mrb[0].mxu1 }
 0x2b1   :  { %v319_v1 = vadd.f32 %v384_v0, %v348_v63  ;;  %v313_v2 = vpop.f32.mrb[1].mxu1 }
 0x2b2   :  { %v314_v3 = vadd.f32 %v348_v63, %v313_v2 }
 0x2b3   :  { %324 = vst.msk [vmem:[#allocation9 + $0x8] sm:$0xff] %vm322_vm1, %v319_v1 }
 0x2b4   :  { %323 = vst.msk [vmem:[#allocation9] sm:$0xff] %vm322_vm1, %v314_v3 }
 0x2b5   :  { %492 = shalt.err (!%p489_p0)
}
 0x2b6   :  { %s493_s6 = scalar_lea.hbm %s651_s7, 256 }
 0x2b7   :  { %p494_p1 = scmp.ne.s32.totalorder %s651_s7, %s493_s6  ;;  %p497_p2 = scmp.lt.u32.totalorder %s493_s6, %s651_s7 }
 0x2b9   :  { %p499_p3 = pnand %p497_p2, %p494_p1 }
 0x2bb   :  { %502 = shalt.err (!%p499_p3)
}
 0x2bc   :  { %336 = dma.vmem_to_hbm [thread:$0]  %s331_s21, 256, %s651_s7, [#allocation5], %s511_s13, %s511_s13, %s512_s14  }
 0x2bd   :  { %507 = dma.done.wait [#allocation5], 256  }
 0x2be   :  { %508 = vsyncadd [#allocation5], 4294967040 }
 0x2bf   :  { %340 = vsyncpa [#allocation4], 1 }
 0x2c0   :  { %341 = vsyncpa [#allocation7], 1 }
 0x2c1   :  { %342 = vsyncpa [#allocation5], 1 }

</bundles_post_ra>
